<compile_context>
chip_gen: v5e
topology: v5e:2x2
jax: 0.10.0
libtpu: 0.0.40
codegen_flags: <defaults>
</compile_context>

<pallas_src>
import functools

import jax
import jax.numpy as jnp
from jax.experimental import pallas as pl
from jax.experimental.pallas import tpu as pltpu


def gru_kernel(x_ref, h_ref, a_ref, b_ref, uh_ref, out_ref, *, input_dim):
    D = input_dim
    x = x_ref[...]  # [D, C] f32
    h = h_ref[...]  # [D, C] f32

    # Stack [x; h] -> [2D, C]; cast only the MXU operands to bf16.
    xh = jnp.concatenate([x, h], axis=0).astype(jnp.bfloat16)

    # One fused MXU dot computes both gate pre-activations:
    #   rows [0, D)   : Wz @ x + Uz @ h   (+ bz)   -> update/reset gate
    #   rows [D, 2D)  : Wh @ x            (+ bh)   -> candidate, x-part
    pre = jnp.dot(a_ref[...], xh, preferred_element_type=jnp.float32) + b_ref[...]

    z_pre = pre[:D, :]
    whx_plus_bh = pre[D:, :]

    update = jax.nn.sigmoid(z_pre)
    # Reference forward recomputes the "reset" gate with the update gate's
    # parameters, so reset == update (module bug preserved on purpose).
    reset = update

    # Candidate: tanh(Wh @ x + bh + Uh @ (reset * h)).  Second (dependent) dot.
    rh = (reset * h).astype(jnp.bfloat16)
    h_pre = whx_plus_bh + jnp.dot(uh_ref[...], rh, preferred_element_type=jnp.float32)
    h_cap = jnp.tanh(h_pre)

    # out = (1 - update) * hist + update * h_cap   (f32 gate blend)
    out_ref[...] = ((1.0 - update) * h + update * h_cap).astype(out_ref.dtype)


def pack_params(wz, uz, bz, wh, uh, bh, matmul_dtype=jnp.bfloat16):
    """Fuse gate weights into one block matrix + one bias stack (host side)."""
    a_top = jnp.concatenate([wz, uz], axis=1)                   # [D, 2D]
    a_bot = jnp.concatenate([wh, jnp.zeros_like(uh)], axis=1)   # [D, 2D]
    a = jnp.concatenate([a_top, a_bot], axis=0).astype(matmul_dtype)  # [2D, 2D]
    b = jnp.concatenate([bz, bh], axis=0).astype(jnp.float32)         # [2D, C]
    uh_c = uh.astype(matmul_dtype)                                    # [D, D]
    return a, b, uh_c


def gru_forward(x, h, a_packed, b_packed, uh_packed):
    D, C = x.shape
    full = pl.BlockSpec(memory_space=pltpu.VMEM)  # whole array resident in VMEM
    kernel = functools.partial(gru_kernel, input_dim=D)
    return pl.pallas_call(
        kernel,
        out_shape=jax.ShapeDtypeStruct((D, C), x.dtype),
        in_specs=[full] * 5,
        out_specs=full,
    )(x, h, a_packed, b_packed, uh_packed)


def init_gate_params(key, input_dim, output_dim, dtype=jnp.float32):
    """Deterministic Glorot-style init for W, U; zeros for bias."""
    kw, ku = jax.random.split(key)
    scale = jnp.sqrt(6.0 / (input_dim + input_dim)).astype(dtype)
    w = jax.random.uniform(kw, (input_dim, input_dim), dtype, -scale, scale)
    u = jax.random.uniform(ku, (input_dim, input_dim), dtype, -scale, scale)
    b = jnp.zeros((input_dim, output_dim), dtype)
    return w, u, b


def reference_gru(x, h, wz, uz, bz, wh, uh, bh):
    """Pure-JAX f32 reference mirroring the PyTorch forward exactly."""
    update = jax.nn.sigmoid(wz @ x + uz @ h + bz)
    reset = jax.nn.sigmoid(wz @ x + uz @ h + bz)  # update gate params, as in reference
    h_cap = jnp.tanh(wh @ x + uh @ (reset * h) + bh)
    return (1.0 - update) * h + update * h_cap


if __name__ == "__main__":
    input_dim, output_dim = 32, 128  # rows, cols of the matrix GRU state
    dtype = jnp.float32

    key = jax.random.PRNGKey(0)
    k_x, k_h, k_up, k_rs, k_ht = jax.random.split(key, 5)

    x = jax.random.normal(k_x, (input_dim, output_dim), dtype)
    hist = jax.random.normal(k_h, (input_dim, output_dim), dtype)

    # update gate, reset gate (initialized like the module, though unused by
    # forward), and htilda gate parameters.
    wz, uz, bz = init_gate_params(k_up, input_dim, output_dim, dtype)
    _wr, _ur, _br = init_gate_params(k_rs, input_dim, output_dim, dtype)  # unused
    wh, uh, bh = init_gate_params(k_ht, input_dim, output_dim, dtype)

    a_packed, b_packed, uh_packed = pack_params(wz, uz, bz, wh, uh, bh)

    out = gru_forward(x, hist, a_packed, b_packed, uh_packed)
    out = jax.block_until_ready(out)

    ref = reference_gru(x, hist, wz, uz, bz, wh, uh, bh)
    assert out.shape == (input_dim, output_dim)
    # Tolerance loosened deliberately: matmul operands are bf16 (MXU-native),
    # accumulation and gate math stay f32.
    assert jnp.allclose(out, ref, atol=5e-2, rtol=5e-2), "mismatch vs reference"

    print("KERNEL_OK")
</pallas_src>

<mosaic_0001>
module attributes {stable_mosaic.version = 11 : i64} {
  func.func @gru_kernel(%arg0: memref<32x128xf32, #tpu.memory_space<vmem>>, %arg1: memref<32x128xf32, #tpu.memory_space<vmem>>, %arg2: memref<64x64xbf16, #tpu.memory_space<vmem>>, %arg3: memref<64x128xf32, #tpu.memory_space<vmem>>, %arg4: memref<32x32xbf16, #tpu.memory_space<vmem>>, %arg5: memref<32x128xf32, #tpu.memory_space<vmem>>) attributes {dimension_semantics = [], scalar_prefetch = 0 : i64, scratch_operands = 0 : i64, tpu.core_type = #tpu.core_type<tc>} {
    %c0 = arith.constant 0 : index
    %c0_0 = arith.constant 0 : index
    %0 = vector.load %arg0[%c0, %c0_0] : memref<32x128xf32, #tpu.memory_space<vmem>>, vector<32x128xf32>
    %c0_1 = arith.constant 0 : index
    %c0_2 = arith.constant 0 : index
    %1 = vector.load %arg1[%c0_1, %c0_2] : memref<32x128xf32, #tpu.memory_space<vmem>>, vector<32x128xf32>
    %2 = tpu.concatenate %0, %1 in 0 : vector<32x128xf32>, vector<32x128xf32> -> vector<64x128xf32>
    %3 = arith.truncf %2 : vector<64x128xf32> to vector<64x128xbf16>
    %c0_3 = arith.constant 0 : index
    %c0_4 = arith.constant 0 : index
    %4 = vector.load %arg2[%c0_3, %c0_4] : memref<64x64xbf16, #tpu.memory_space<vmem>>, vector<64x64xbf16>
    %cst = arith.constant dense<0.000000e+00> : vector<64x128xf32>
    %5 = tpu.matmul %4, %3, %cst {dimension_numbers = #tpu.dot_dimension_numbers<[1], [0], [0], [1], [0, 0, 1, 1], [], []>} : vector<64x64xbf16>, vector<64x128xbf16>, vector<64x128xf32> -> vector<64x128xf32>
    %c0_5 = arith.constant 0 : index
    %c0_6 = arith.constant 0 : index
    %6 = vector.load %arg3[%c0_5, %c0_6] : memref<64x128xf32, #tpu.memory_space<vmem>>, vector<64x128xf32>
    %7 = arith.addf %5, %6 : vector<64x128xf32>
    %8 = vector.extract_strided_slice %7 {offsets = [0, 0], sizes = [32, 128], strides = [1, 1]} : vector<64x128xf32> to vector<32x128xf32>
    %9 = vector.extract_strided_slice %7 {offsets = [32, 0], sizes = [32, 128], strides = [1, 1]} : vector<64x128xf32> to vector<32x128xf32>
    %10 = arith.negf %8 : vector<32x128xf32>
    %11 = math.exp %10 : vector<32x128xf32>
    %cst_7 = arith.constant 1.000000e+00 : f32
    %12 = vector.broadcast %cst_7 : f32 to vector<32x128xf32>
    %13 = arith.addf %12, %11 : vector<32x128xf32>
    %14 = arith.divf %12, %13 : vector<32x128xf32>
    %15 = arith.mulf %14, %1 : vector<32x128xf32>
    %16 = arith.truncf %15 : vector<32x128xf32> to vector<32x128xbf16>
    %c0_8 = arith.constant 0 : index
    %c0_9 = arith.constant 0 : index
    %17 = vector.load %arg4[%c0_8, %c0_9] : memref<32x32xbf16, #tpu.memory_space<vmem>>, vector<32x32xbf16>
    %cst_10 = arith.constant dense<0.000000e+00> : vector<32x128xf32>
    %18 = tpu.matmul %17, %16, %cst_10 {dimension_numbers = #tpu.dot_dimension_numbers<[1], [0], [0], [1], [0, 0, 1, 1], [], []>} : vector<32x32xbf16>, vector<32x128xbf16>, vector<32x128xf32> -> vector<32x128xf32>
    %19 = arith.addf %9, %18 : vector<32x128xf32>
    %20 = math.tanh %19 : vector<32x128xf32>
    %cst_11 = arith.constant 1.000000e+00 : f32
    %21 = vector.broadcast %cst_11 : f32 to vector<32x128xf32>
    %22 = arith.subf %21, %14 : vector<32x128xf32>
    %23 = arith.mulf %22, %1 : vector<32x128xf32>
    %24 = arith.mulf %14, %20 : vector<32x128xf32>
    %25 = arith.addf %23, %24 : vector<32x128xf32>
    %c0_12 = arith.constant 0 : index
    %c0_13 = arith.constant 0 : index
    %26 = vector.load %arg5[%c0_12, %c0_13] : memref<32x128xf32, #tpu.memory_space<vmem>>, vector<32x128xf32>
    tpu.vector_store %arg5[%c0_12, %c0_13], %25 {strides = array<i32>} : memref<32x128xf32, #tpu.memory_space<vmem>>, vector<32x128xf32>,
    return
  }
}

</mosaic_0001>

<bundles_post_ra>
// kernel: tpu_custom_call.1
= control target key start
LH: loop header
LB: loop body
LE: loop exit
PB: predicated region body
PF: predicated region fallthrough
CT: control target
= control target key end

     0   :  { %10 = vsyncpa [#allocation3], 0  ;;  %s735_s0 = inlined_call_operand.hbm [shape: f32[32,128], index: 0, kind: input, shape index: {}]   ;;  %s736_s1 = inlined_call_operand.hbm [shape: f32[32,128], index: 1, kind: input, shape index: {}]   ;;  %s737_s2 = inlined_call_operand.hbm [shape: bf16[64,64], index: 2, kind: input, shape index: {}]   ;;  %s738_s3 = inlined_call_operand.hbm [shape: f32[64,128], index: 3, kind: input, shape index: {}]   ;;  %s739_s4 = inlined_call_operand.hbm [shape: bf16[32,32], index: 4, kind: input, shape index: {}]   ;;  %s740_s5 = inlined_call_operand.hbm [shape: f32[32,128], index: 5, kind: output, shape index: {}]  }
   0x1   :  { %11 = vsyncpa [#allocation6], 0 }
   0x2   :  { %12 = vsyncpa [#allocation9], 0 }
   0x3   :  { %13 = vsyncpa [#allocation4], 0  ;;  %s31_s20 = sshll.u32 %s736_s1, 4  ;;  %s595_s21 = smov [#allocation5]   ;;  %s32_s20 = int_to_ptr.hbm [resolvable:$true] %s31_s20 }
   0x4   :  { %s33_s22 = sshll.u32 %s595_s21, 4  ;;  %s57_s25 = sshll.u32 %s738_s3, 4  ;;  %s34_s22 = int_to_ptr.vmem [resolvable:$true] %s33_s22  ;;  %s58_s25 = int_to_ptr.hbm [resolvable:$true] %s57_s25 }
   0x5   :  { %s596_s26 = smov 128   ;;  %s597_s27 = smov 8  }
   0x6   :  { %39 = dma.hbm_to_vmem [thread:$0]  %s32_s20, 512, %s34_s22, [#allocation6], %s596_s26, %s596_s26, %s597_s27  }
   0x7   :  { %s598_s28 = smov [#allocation8]   ;;  %s18_s1 = sshll.u32 %s735_s0, 4  ;;  %s19_s1 = int_to_ptr.hbm [resolvable:$true] %s18_s1 }
   0x8   :  { %s59_s29 = sshll.u32 %s598_s28, 4  ;;  %s44_s8 = sshll.u32 %s737_s2, 4  ;;  %s60_s29 = int_to_ptr.vmem [resolvable:$true] %s59_s29  ;;  %s45_s8 = int_to_ptr.hbm [resolvable:$true] %s44_s8 }
   0x9   :  { %65 = dma.hbm_to_vmem [thread:$0]  %s58_s25, 1024, %s60_s29, [#allocation9], %s596_s26, %s596_s26, %s597_s27  }
   0xa   :  { %s599_s9 = smov [#allocation2]   ;;  %s600_s11 = smov [#allocation7]  }
   0xb   :  { %s20_s10 = sshll.u32 %s599_s9, 4  ;;  %s46_s0 = sshll.u32 %s600_s11, 4  ;;  %s21_s10 = int_to_ptr.vmem [resolvable:$true] %s20_s10  ;;  %s47_s0 = int_to_ptr.vmem [resolvable:$true] %s46_s0 }
   0xc   :  { %26 = dma.hbm_to_vmem [thread:$0]  %s19_s1, 512, %s21_s10, [#allocation3], %s596_s26, %s596_s26, %s597_s27  }
   0xd   :  { %s601_s12 = smov 64   ;;  %s602_s13 = smov 4  }
   0xe   :  { %52 = dma.hbm_to_vmem [thread:$0]  %s45_s8, 512, %s47_s0, [#allocation6], %s601_s12, %s601_s12, %s602_s13  }
   0xf   :  { %s70_s16 = sshll.u32 %s739_s4, 4  ;;  %s603_s2 = smov [#allocation10]   ;;  %s71_s16 = int_to_ptr.hbm [resolvable:$true] %s70_s16 }
  0x10   :  { %s72_s17 = sshll.u32 %s603_s2, 4  ;;  %s73_s17 = int_to_ptr.vmem [resolvable:$true] %s72_s17 }
  0x11   :  { %78 = dma.hbm_to_vmem [thread:$0]  %s71_s16, 256, %s73_s17, [#allocation9], %s601_s12, %s601_s12, %s602_s13  }
  0x12   :  { %587 = dma.done.wait [#allocation3], 512  }
  0x13   :  { %588 = vsyncadd [#allocation3], 4294966784 }
  0x14   :  { %589 = dma.done.wait [#allocation6], 1024  }
  0x15   :  { %590 = vsyncadd [#allocation6], 4294966272 }
  0x16   :  { %591 = dma.done.wait [#allocation9], 1280  }
  0x17   :  { %592 = vsyncadd [#allocation9], 4294966016  ;;  %v659_v0 = vld [vmem:[#allocation5 + $0x10] sm:$0xff]  ;;  %v661_v1 = vld [vmem:[#allocation5 + $0x18] sm:$0xff]  ;;  %vm148_vm0 = vcmask 523264   ;;  %s604_s4 = smov [#allocation11]  }
  0x18   :  { %v663_v2 = vld [vmem:[#allocation5] sm:$0xff]  ;;  %v111_v3 = vpack.c.bf16 %v661_v1, %v659_v0  ;;  %v667_v4 = vld [vmem:[#allocation5 + $0x8] sm:$0xff]  ;;  %v102_v6 = vld [vmem:[#allocation2 + $0x10] sm:$0xff]  ;;  %s344_s18 = sshll.u32 %s604_s4, 4  ;;  %s346_s21 = sshll.u32 %s740_s5, 4  ;;  %s345_s18 = int_to_ptr.vmem [resolvable:$true] %s344_s18  ;;  %s347_s21 = int_to_ptr.hbm [resolvable:$true] %s346_s21 }
  0x19   :  { %v110_v5 = vpack.c.bf16 %v667_v4, %v663_v2  ;;  %v103_v7 = vld [vmem:[#allocation2 + $0x18] sm:$0xff]  ;;  %v100_v9 = vld [vmem:[#allocation2] sm:$0xff]  ;;  %v101_v10 = vld [vmem:[#allocation2 + $0x8] sm:$0xff] }
  0x1a   :  { %165 = vmatpush.bf16.msra.mxu0 %v111_v3  ;;  %401 = vmatpush.bf16.msra.mxu2 %v111_v3  ;;  %v109_v8 = vpack.c.bf16 %v103_v7, %v102_v6  ;;  %v108_v11 = vpack.c.bf16 %v101_v10, %v100_v9  ;;  %v395_v12 = vld [vmem:[#allocation7] sm:$0xff]  ;;  %v396_v13 = vld [vmem:[#allocation7 + $0x8] sm:$0xff]  ;;  %v397_v15 = vld [vmem:[#allocation7 + $0x10] sm:$0xff] }
  0x1b   :  { %402 = vmatpush.bf16.msra.mxu3 %v111_v3  ;;  %v120_v14 = vld [vmem:[#allocation8] sm:$0xff]  ;;  %v122_v19 = vld [vmem:[#allocation8 + $0x10] sm:$0xff]  ;;  %v121_v21 = vld [vmem:[#allocation8 + $0x8] sm:$0xff] }
  0x1c   :  { %v123_v28 = vld [vmem:[#allocation8 + $0x18] sm:$0xff] }
  0x1d   :  { %v398_v37 = vld [vmem:[#allocation7 + $0x18] sm:$0xff] }
  0x1e   :  { %166 = vmatpush.bf16.msra.mxu0 %v110_v5  ;;  %403 = vmatpush.bf16.msra.mxu2 %v110_v5 }
  0x1f   :  { %404 = vmatpush.bf16.msra.mxu3 %v110_v5 }
  0x22   :  { %167 = vmatpush.bf16.msra.mxu0 %v109_v8  ;;  %405 = vmatpush.bf16.msra.mxu2 %v109_v8 }
  0x23   :  { %406 = vmatpush.bf16.msra.mxu3 %v109_v8 }
  0x26   :  { %168 = vmatpush.bf16.msra.mxu0 %v108_v11  ;;  %407 = vmatpush.bf16.msra.mxu2 %v108_v11 }
  0x27   :  { %408 = vmatpush.bf16.msra.mxu3 %v108_v11 }
  0x29   :  { %377 = vmatmul.msk.bf16.vlgmr.msra.gmra.mxu0 %vm148_vm0, %v395_v12  ;;  %378 = vmatmul.msk.bf16.vlgmr.msra.gmra.mxu2 %vm148_vm0, %v396_v13 }
  0x2a   :  { %380 = vmatmul.msk.bf16.vlgmr.msra.gmra.mxu3 %vm148_vm0, %v398_v37 }
  0x39   :  { %379 = vmatmul.msk.bf16.gmra.mxu2 %vm148_vm0, %v397_v15 }
  0xa6   :  { %v170_v16 = vpop.f32.mrf.mxu0 }
  0xa7   :  { %v171_v17 = vadd.f32 %v170_v16, %v120_v14 }
  0xa9   :  { %v381_v18 = vmul.f32 -1.442695, %v171_v17 }
  0xab   :  { %419 = vpow2.f32 %v381_v18 }
  0xac   :  { %v175_v20 = vpop.f32.mrf.mxu2 }
  0xad   :  { %v176_v22 = vadd.f32 %v175_v20, %v122_v19 }
  0xae   :  { %v172_v23 = vpop.f32.mrf.mxu0 }
  0xaf   :  { %v383_v24 = vmul.f32 -1.442695, %v176_v22  ;;  %v173_v25 = vadd.f32 %v172_v23, %v121_v21 }
  0xb1   :  { %v420_v26 = vpop.eup %419  ;;  %421 = vpow2.f32 %v383_v24  ;;  %v382_v27 = vmul.f32 -1.442695, %v173_v25 }
  0xb2   :  { %v674_v29 = vadd.f32 1.0, %v420_v26 }
  0xb3   :  { %423 = vpow2.f32 %v382_v27 }
  0xb4   :  { %v177_v30 = vpop.f32.mrf.mxu2  ;;  %425 = vrcp.f32 %v674_v29  ;;  %vm211_vm2 = vweird.f32 %v674_v29  ;;  %v215_v8 = vand.u32 2147483647, %v674_v29  ;;  %v217_v9 = vand.u32 2147483648, %v674_v29 }
  0xb5   :  { %v178_v31 = vadd.f32 %v177_v30, %v123_v28  ;;  %v400_v30 = vld [vmem:[#allocation10 + $0x8] sm:$0xff] }
  0xb6   :  { %v218_v20 = vor.u32 1.1754944e-38, %v217_v9  ;;  %vm216_vm0 = vcmp.eq.f32.partialorder %v215_v8, 8.507059e+37 }
  0xb7   :  { %v422_v32 = vpop.eup %421  ;;  %v384_v33 = vmul.f32 -1.442695, %v178_v31 }
  0xb8   :  { %v204_v34 = vadd.f32 1.0, %v422_v32  ;;  %v124_v32 = vld [vmem:[#allocation8 + $0x20] sm:$0xff] }
  0xb9   :  { %v424_v35 = vpop.eup %423  ;;  %427 = vpow2.f32 %v384_v33 }
  0xba   :  { %429 = vrcp.f32 %v204_v34  ;;  %v203_v36 = vadd.f32 1.0, %v424_v35  ;;  %v677_v38 = vpop.eup %425  ;;  %vm241_vm3 = vweird.f32 %v204_v34  ;;  %v245_v55 = vand.u32 2147483647, %v204_v34 }
  0xbb   :  { %v207_v41 = vmul.f32 %v677_v38, %v674_v29  ;;  %v247_v56 = vand.u32 2147483648, %v204_v34  ;;  %vm212_vm4 = vweird.f32 %v677_v38  ;;  %v399_v29 = vld [vmem:[#allocation10] sm:$0xff] }
  0xbc   :  { %431 = vrcp.f32 %v203_v36  ;;  %vm226_vm5 = vweird.f32 %v203_v36  ;;  %v230_v62 = vand.u32 2147483647, %v203_v36  ;;  %v232_v63 = vand.u32 2147483648, %v203_v36  ;;  %vm702_vm12 = vmor %vm211_vm2, %vm212_vm4  ;;  %v180_v31 = vpop.f32.mrf.mxu2 }
  0xbd   :  { %v208_v47 = vsub.f32 1.0, %v207_v41  ;;  %v248_v7 = vor.u32 1.1754944e-38, %v247_v56  ;;  %vm246_vm10 = vcmp.eq.f32.partialorder %v245_v55, 8.507059e+37  ;;  %v181_v33 = vadd.f32 %v180_v31, %v124_v32  ;;  %v127_v56 = vld [vmem:[#allocation8 + $0x38] sm:$0xff] }
  0xbe   :  { %v233_v16 = vor.u32 1.1754944e-38, %v232_v63  ;;  %vm231_vm15 = vcmp.eq.f32.partialorder %v230_v62, 8.507059e+37 }
  0xbf   :  { %v428_v39 = vpop.eup %427  ;;  %v209_v52 = vmul.f32 %v677_v38, %v208_v47 }
  0xc0   :  { %v430_v40 = vpop.eup %429  ;;  %v205_v42 = vadd.f32 1.0, %v428_v39 }
  0xc1   :  { %v237_v43 = vmul.f32 %v430_v40, %v204_v34  ;;  %vm242_vm1 = vweird.f32 %v430_v40  ;;  %v210_v61 = vadd.f32 %v677_v38, %v209_v52 }
  0xc2   :  { %v432_v44 = vpop.eup %431  ;;  %433 = vrcp.f32 %v205_v42  ;;  %vm685_vm7 = vmor %vm241_vm3, %vm242_vm1  ;;  %v262_v60 = vand.u32 2147483648, %v205_v42  ;;  %v260_v6 = vand.u32 2147483647, %v205_v42  ;;  %vm256_vm11 = vweird.f32 %v205_v42 }
  0xc3   :  { %v222_v45 = vmul.f32 %v432_v44, %v203_v36  ;;  %v238_v46 = vsub.f32 1.0, %v237_v43  ;;  %vm227_vm6 = vweird.f32 %v432_v44  ;;  %v214_v18 = vsel %vm702_vm12, %v677_v38, %v210_v61  ;;  %v125_v36 = vld [vmem:[#allocation8 + $0x28] sm:$0xff] }
  0xc4   :  { %vm694_vm9 = vmor %vm226_vm5, %vm227_vm6  ;;  %v263_v15 = vor.u32 1.1754944e-38, %v262_v60  ;;  %vm261_vm14 = vcmp.eq.f32.partialorder %v260_v6, 8.507059e+37  ;;  %v219_v24 = vsel %vm216_vm0, %v218_v20, %v214_v18  ;;  %vm286_vm1 = vcmask 261120   ;;  %v182_v37 = vpop.f32.mrf.mxu2 }
  0xc5   :  { %v223_v48 = vsub.f32 1.0, %v222_v45  ;;  %v239_v49 = vmul.f32 %v430_v40, %v238_v46  ;;  %v266_v27 = vmul.f32 %v219_v24, %v663_v2  ;;  %v183_v38 = vadd.f32 %v182_v37, %v125_v36  ;;  %v126_v45 = vld [vmem:[#allocation8 + $0x30] sm:$0xff]  ;;  %v185_v46 = vpop.f32.mrf.mxu3 }
  0xc6   :  { %v320_v39 = vsub.f32 1.0, %v219_v24 }
  0xc7   :  { %v224_v50 = vmul.f32 %v432_v44, %v223_v48  ;;  %v240_v53 = vadd.f32 %v430_v40, %v239_v49  ;;  %v186_v48 = vadd.f32 %v185_v46, %v126_v45 }
  0xc8   :  { %v434_v51 = vpop.eup %433  ;;  %v324_v43 = vmul.f32 %v320_v39, %v663_v2 }
  0xc9   :  { %v252_v54 = vmul.f32 %v434_v51, %v205_v42  ;;  %v225_v58 = vadd.f32 %v432_v44, %v224_v50  ;;  %v244_v3 = vsel %vm685_vm7, %v430_v40, %v240_v53  ;;  %vm257_vm8 = vweird.f32 %v434_v51 }
  0xca   :  { %v708_v14 = vsel %vm246_vm10, %v248_v7, %v244_v3  ;;  %vm258_vm13 = vmor %vm256_vm11, %vm257_vm8 }
  0xcb   :  { %v253_v57 = vsub.f32 1.0, %v252_v54  ;;  %v229_v13 = vsel %vm694_vm9, %v432_v44, %v225_v58  ;;  %v268_v22 = vmul.f32 %v708_v14, %v659_v0  ;;  %v322_v2 = vsub.f32 1.0, %v708_v14 }
  0xcc   :  { %v234_v21 = vsel %vm231_vm15, %v233_v16, %v229_v13 }
  0xcd   :  { %v254_v5 = vmul.f32 %v434_v51, %v253_v57  ;;  %v267_v26 = vmul.f32 %v234_v21, %v667_v4  ;;  %v321_v49 = vsub.f32 1.0, %v234_v21  ;;  %v187_v57 = vpop.f32.mrf.mxu3  ;;  %v326_v62 = vmul.f32 %v322_v2, %v659_v0 }
  0xce   :  { %v188_v58 = vadd.f32 %v187_v57, %v127_v56 }
  0xcf   :  { %v255_v11 = vadd.f32 %v434_v51, %v254_v5  ;;  %v270_v28 = vpack.c.bf16 %v267_v26, %v266_v27  ;;  %v325_v53 = vmul.f32 %v321_v49, %v667_v4 }
  0xd1   :  { %v259_v17 = vsel %vm258_vm13, %v434_v51, %v255_v11 }
  0xd2   :  { %v713_v19 = vsel %vm261_vm14, %v263_v15, %v259_v17 }
  0xd3   :  { %v269_v23 = vmul.f32 %v713_v19, %v661_v1  ;;  %v323_v4 = vsub.f32 1.0, %v713_v19 }
  0xd5   :  { %v271_v25 = vpack.c.bf16 %v269_v23, %v268_v22  ;;  %v327_v6 = vmul.f32 %v323_v4, %v661_v1 }
  0xd7   :  { %299 = vmatpush.bf16.msra.mxu1 %v271_v25 }
  0xdb   :  { %300 = vmatpush.bf16.msra.mxu1 %v270_v28 }
  0xde   :  { %393 = vmatmul.msk.bf16.vlgmr.msra.gmra.mxu1 %vm286_vm1, %v399_v29 }
  0xee   :  { %394 = vmatmul.msk.bf16.gmra.mxu1 %vm286_vm1, %v400_v30 }
 0x15b   :  { %v302_v34 = vpop.f32.mrf.mxu1 }
 0x15c   :  { %v312_v35 = vadd.f32 %v302_v34, %v181_v33 }
 0x15e   :  { %435 = vtanh.f32 %v312_v35 }
 0x163   :  { %v304_v40 = vpop.f32.mrf.mxu1 }
 0x164   :  { %v436_v41 = vpop.eup %435  ;;  %v313_v42 = vadd.f32 %v304_v40, %v183_v38 }
 0x165   :  { %v328_v44 = vmul.f32 %v436_v41, %v219_v24 }
 0x166   :  { %437 = vtanh.f32 %v313_v42 }
 0x167   :  { %v332_v47 = vadd.f32 %v328_v44, %v324_v43 }
 0x169   :  { %336 = vst [vmem:[#allocation11] sm:$0xff] %v332_v47 }
 0x16b   :  { %v307_v50 = vpop.f32.mrf.mxu1 }
 0x16c   :  { %v438_v51 = vpop.eup %437  ;;  %v314_v52 = vadd.f32 %v307_v50, %v186_v48 }
 0x16d   :  { %v329_v54 = vmul.f32 %v438_v51, %v234_v21 }
 0x16e   :  { %439 = vtanh.f32 %v314_v52 }
 0x16f   :  { %v333_v55 = vadd.f32 %v329_v54, %v325_v53 }
 0x171   :  { %337 = vst [vmem:[#allocation11 + $0x8] sm:$0xff] %v333_v55 }
 0x173   :  { %v309_v59 = vpop.f32.mrf.mxu1 }
 0x174   :  { %v440_v60 = vpop.eup %439  ;;  %v315_v61 = vadd.f32 %v309_v59, %v188_v58 }
 0x175   :  { %v330_v63 = vmul.f32 %v440_v60, %v708_v14 }
 0x176   :  { %441 = vtanh.f32 %v315_v61 }
 0x177   :  { %v334_v3 = vadd.f32 %v330_v63, %v326_v62 }
 0x179   :  { %338 = vst [vmem:[#allocation11 + $0x10] sm:$0xff] %v334_v3 }
 0x17c   :  { %v442_v5 = vpop.eup %441 }
 0x17d   :  { %v331_v7 = vmul.f32 %v442_v5, %v713_v19 }
 0x17f   :  { %v335_v8 = vadd.f32 %v331_v7, %v327_v6 }
 0x181   :  { %339 = vst [vmem:[#allocation11 + $0x18] sm:$0xff] %v335_v8 }
 0x182   :  { %352 = dma.vmem_to_hbm [thread:$0]  %s345_s18, 512, %s347_s21, [#allocation4], %s596_s26, %s596_s26, %s597_s27  }
 0x183   :  { %593 = dma.done.wait [#allocation4], 512  }
 0x184   :  { %594 = vsyncadd [#allocation4], 4294966784 }
 0x185   :  { %357 = vsyncpa [#allocation3], 1 }
 0x186   :  { %358 = vsyncpa [#allocation6], 1 }
 0x187   :  { %359 = vsyncpa [#allocation9], 1 }
 0x188   :  { %360 = vsyncpa [#allocation4], 1 }

</bundles_post_ra>
